<compile_context>
chip_gen: v7x
topology: tpu7x:2x2x1
jax: 0.10.0
libtpu: 0.0.40
codegen_flags: <defaults>
</compile_context>

<pallas_src>
import jax
import jax.numpy as jnp
from jax.experimental import pallas as pl
from jax.experimental.pallas import tpu as pltpu


def _make_kernel(hw):
    def kernel(params_ref, x_ref, o_ref):
        # params_ref: (1, 2) SMEM -> [scale = w / (H*W), bias]
        # x_ref:      (BN, HW)  VMEM (lane-dense channel-1 rows)   [fast path]
        #             or (BN, C*HW) when HW is not lane aligned     [fallback]
        # o_ref:      (1, 1, BN) VMEM lane-dense output row
        x = x_ref[...]
        if x.shape[-1] != hw:
            # Fallback path: full row was DMA'd; take channel 1's slab (static slice).
            x = x[:, hw:2 * hw]
        s = jnp.sum(x.astype(jnp.float32), axis=-1)          # (BN,)
        scale = params_ref[0, 0]
        bias = params_ref[0, 1]
        o_ref[...] = (s * scale + bias).reshape(o_ref.shape).astype(o_ref.dtype)
    return kernel


def algae_seg_to_cls(x, conv_weight, conv_bias):
    """x: (N, C, H, W) float32 (C >= 2); conv_weight / conv_bias: scalars of the
    1x1 Conv2d(in=1, out=1, bias=True). Returns (N, 1, 1, 1) float32."""
    N, C, H, W = x.shape
    assert C >= 2, "forward indexes channel 1"
    HW = H * W

    # Fold the mean normalization into the conv weight; pack into one SMEM operand.
    scale = jnp.asarray(conv_weight, jnp.float32) / float(HW)
    bias = jnp.asarray(conv_bias, jnp.float32)
    params = jnp.stack([scale, bias]).reshape(1, 2)

    # Free metadata reshape (contiguous NCHW): row n = [c0 | c1 | c2 | ...], each HW wide.
    x_flat = x.reshape(N, C * HW)

    # Batch-block size: as large as a conservative double-buffered VMEM budget allows
    # (12 MiB x 2 fits the default scoped VMEM on v5e/v6e/v7x alike). Typically BN = N
    # and the grid collapses to a single step.
    bytes_per_row = HW * 4
    vmem_budget = 12 * 1024 * 1024
    max_rows = max(1, vmem_budget // (2 * bytes_per_row))
    if N <= max_rows:
        BN = N
    else:
        BN = max(8, (max_rows // 8) * 8)   # keep sublane-aligned when tiling the batch
    G = pl.cdiv(N, BN)

    # Lane-dense channel-1 selection via index_map when HW is a multiple of 128;
    # otherwise fall back to DMA-ing full rows and slicing channel 1 in-kernel.
    lane_dense = (HW % 128 == 0)
    if lane_dense:
        in_block, in_map = (BN, HW), (lambda g: (g, 1))
    else:
        in_block, in_map = (BN, C * HW), (lambda g: (g, 0))

    cost = pl.CostEstimate(
        flops=N * HW + 2 * N,
        transcendentals=0,
        bytes_accessed=N * HW * 4 + N * 4 + 8,
    )

    out = pl.pallas_call(
        _make_kernel(HW),
        out_shape=jax.ShapeDtypeStruct((G, 1, BN), jnp.float32),
        grid=(G,),
        in_specs=[
            pl.BlockSpec((1, 2), lambda g: (0, 0), memory_space=pltpu.SMEM),
            pl.BlockSpec(in_block, in_map),
        ],
        out_specs=pl.BlockSpec((1, 1, BN), lambda g: (g, 0, 0)),
        compiler_params=pltpu.CompilerParams(
            dimension_semantics=("parallel",),
        ),
        cost_estimate=cost,
    )(params, x_flat)

    # Lane-dense kernel output -> module's (N, 1, 1, 1) layout (drop any batch padding).
    return out.reshape(G * BN)[:N].reshape(N, 1, 1, 1)


if __name__ == "__main__":
    key = jax.random.PRNGKey(0)
    kx, kw, kb = jax.random.split(key, 3)

    # Small shapes consistent with the module's forward (NCHW).
    N, C, H, W = 2, 4, 16, 16
    x = jax.random.normal(kx, (N, C, H, W), dtype=jnp.float32)

    # Deterministic synthetic Conv2d(1, 1, kernel_size=1, bias=True) params.
    conv_weight = jax.random.normal(kw, (), dtype=jnp.float32)  # weight[0,0,0,0]
    conv_bias = jax.random.normal(kb, (), dtype=jnp.float32)    # bias[0]

    out = algae_seg_to_cls(x, conv_weight, conv_bias)
    out = jax.block_until_ready(out)

    # Reference in plain JAX (mirrors the PyTorch forward).
    ref = jnp.mean(x[:, 1:2, :, :], axis=(2, 3), keepdims=True) * conv_weight + conv_bias
    assert out.shape == (N, 1, 1, 1)
    assert jnp.allclose(out, ref, atol=1e-5, rtol=1e-5)

    print("KERNEL_OK")
</pallas_src>

<mosaic_0001>
module attributes {stable_mosaic.version = 11 : i64} {
  func.func @kernel(%arg0: i32, %arg1: memref<1x2xf32, #tpu.memory_space<smem>>, %arg2: memref<2x256xf32, #tpu.memory_space<vmem>>, %arg3: memref<1x1x2xf32, #tpu.memory_space<vmem>>) attributes {dimension_semantics = [#tpu.dimension_semantics<parallel>], iteration_bounds = array<i64: 1>, scalar_prefetch = 0 : i64, scratch_operands = 0 : i64, tpu.core_type = #tpu.core_type<tc>, window_params = [{transform_indices = @transform_0, window_bounds = array<i64: 1, 2>}, {transform_indices = @transform_1, window_bounds = array<i64: 2, 256>}, {transform_indices = @transform_2, window_bounds = array<i64: 1, 1, 2>}]} {
    %c0 = arith.constant 0 : index
    %c0_0 = arith.constant 0 : index
    %0 = vector.load %arg2[%c0, %c0_0] : memref<2x256xf32, #tpu.memory_space<vmem>>, vector<2x256xf32>
    %cst = arith.constant dense<0.000000e+00> : vector<2xf32>
    %1 = vector.multi_reduction <add>, %0, %cst [1] : vector<2x256xf32> to vector<2xf32>
    %c0_1 = arith.constant 0 : index
    %c0_2 = arith.constant 0 : index
    %2 = memref.load %arg1[%c0_1, %c0_2] : memref<1x2xf32, #tpu.memory_space<smem>>
    %c0_3 = arith.constant 0 : index
    %c1 = arith.constant 1 : index
    %3 = memref.load %arg1[%c0_3, %c1] : memref<1x2xf32, #tpu.memory_space<smem>>
    %4 = vector.broadcast %2 : f32 to vector<2xf32>
    %5 = arith.mulf %1, %4 : vector<2xf32>
    %6 = vector.broadcast %3 : f32 to vector<2xf32>
    %7 = arith.addf %5, %6 : vector<2xf32>
    %8 = vector.shape_cast %7 : vector<2xf32> to vector<1x1x2xf32>
    %c0_4 = arith.constant 0 : index
    %c0_5 = arith.constant 0 : index
    %c0_6 = arith.constant 0 : index
    %9 = vector.load %arg3[%c0_4, %c0_5, %c0_6] : memref<1x1x2xf32, #tpu.memory_space<vmem>>, vector<1x1x2xf32>
    tpu.vector_store %arg3[%c0_4, %c0_5, %c0_6], %8 {strides = array<i32>} : memref<1x1x2xf32, #tpu.memory_space<vmem>>, vector<1x1x2xf32>,
    return
  }
  func.func @transform_0(%arg0: i32) -> (i32, i32) {
    %c0_i32 = arith.constant 0 : i32
    %c0_i32_0 = arith.constant 0 : i32
    %c0_i32_1 = arith.constant 0 : i32
    return %c0_i32, %c0_i32_0 : i32, i32
  }
  func.func @transform_1(%arg0: i32) -> (i32, i32) {
    %c1_i32 = arith.constant 1 : i32
    %c0_i32 = arith.constant 0 : i32
    return %arg0, %c1_i32 : i32, i32
  }
  func.func @transform_2(%arg0: i32) -> (i32, i32, i32) {
    %c0_i32 = arith.constant 0 : i32
    %c0_i32_0 = arith.constant 0 : i32
    %c0_i32_1 = arith.constant 0 : i32
    return %arg0, %c0_i32, %c0_i32_0 : i32, i32, i32
  }
}

</mosaic_0001>

<bundles_post_ra>
// kernel: tpu_custom_call.1
= control target key start
LH: loop header
LB: loop body
LE: loop exit
PB: predicated region body
PF: predicated region fallthrough
CT: control target
= control target key end

     0   :  { %7 = vsyncpa [#allocation5], 0  ;;  %s208_s0 = inlined_call_operand.hbm [shape: f32[1,2], index: 0, kind: input, shape index: {}]   ;;  %s209_s1 = inlined_call_operand.hbm [shape: f32[2,1024], index: 1, kind: input, shape index: {}]   ;;  %s210_s2 = inlined_call_operand.hbm [shape: f32[1,1,2], index: 2, kind: output, shape index: {}]  }
   0x1   :  { %8 = vsyncpa [#allocation3], 0 }
   0x2   :  { %9 = vsyncpa [#allocation4], 0  ;;  %s91_s11 = scalar_lea.hbm %s208_s0, 16 }
   0x3   :  { %p92_p0 = scmp.ne.s32.totalorder %s208_s0, %s91_s11  ;;  %p95_p1 = scmp.lt.u32.totalorder %s91_s11, %s208_s0 }
   0x5   :  { %p97_p2 = pnand %p95_p1, %p92_p0 }
   0x7   :  { %100 = shalt.err (!%p97_p2)
}
   0x8   :  { %s154_s16 = smov [#allocation2]   ;;  %s23_s21 = scalar_lea.hbm %s209_s1, 64 }
   0x9   :  { %17 = dma.hbm_to_smem %s208_s0, 16, %s154_s16, [#allocation5]  }
   0xa   :  { %s155_s22 = smov [#allocation6]   ;;  %s125_s26 = scalar_lea.hbm %s209_s1, 128 }
   0xb   :  { %s25_s23 = sshll.u32 %s155_s22, 4  ;;  %p102_p3 = scmp.ne.s32.totalorder %s23_s21, %s125_s26  ;;  %s26_s23 = int_to_ptr.vmem [resolvable:$true] %s25_s23 }
   0xc   :  { %s103_s29 = scalar_lea.hbm %s209_s1, 256  ;;  %p104_p4 = scmp.lt.u32.totalorder %s23_s21, %s209_s1 }
   0xd   :  { %p105_p5 = scmp.lt.u32.totalorder %s103_s29, %s125_s26  ;;  %p107_p7 = scmp.lt.u32.totalorder %s125_s26, %s23_s21 }
   0xf   :  { %p106_p6 = por %p105_p5, %p104_p4 }
  0x11   :  { %p108_p8 = por %p107_p7, %p106_p6 }
  0x13   :  { %p109_p9 = pnand %p108_p8, %p102_p3 }
  0x15   :  { %112 = shalt.err (!%p109_p9)
}
  0x16   :  { %s113_s0 = scalar_lea.vmem %s26_s23, 64  ;;  %p118_p11 = scmp.lt.s32.totalorder %s26_s23, %s26_s23 }
  0x17   :  { %p114_p10 = scmp.ne.s32.totalorder %s26_s23, %s113_s0  ;;  %p119_p12 = scmp.lt.s32.totalorder %s113_s0, %s113_s0 }
  0x19   :  { %p120_p13 = por %p119_p12, %p118_p11 }
  0x1b   :  { %p121_p0 = pnand %p120_p13, %p114_p10 }
  0x1d   :  { %124 = shalt.err (!%p121_p0)
}
  0x1e   :  { %28 = dma.hbm_to_vmem [thread:$0]  %s23_s21, 64, %s26_s23, [#allocation3]  }
  0x1f   :  { %148 = dma.done.wait [#allocation5], 16  }
  0x20   :  { %149 = vsyncadd [#allocation5], 4294967280 }
  0x21   :  { %150 = dma.done.wait [#allocation3], 64  }
  0x22   :  { %151 = vsyncadd [#allocation3], 4294967232 }
  0x23   :  { %35 = sfence }
  0x24   :  { %v86_v0 = vld.sshfl [vmem:[#allocation6] sm:$0x33 pattern:$0x76325410]  ;;  %vm48_vm0 = vcmask 1041408   ;;  %s54_s1 = sld [smem:[#allocation2]]  ;;  %v61_v5 = vlaneseq }
  0x25   :  { %v45_v1 = vcombine.high %v86_v0, %v86_v0  ;;  %v49_v2 = vsel %vm48_vm0, %v86_v0, 0.0  ;;  %s87_s4 = sld [smem:[#allocation2 + $0x1]]  ;;  %s156_s5 = smov [#allocation7]   ;;  %vm68_vm1 = vcmask 8192  }
  0x26   :  { %v62_v6 = vand.u32 127, %v61_v5  ;;  %v64_v7 = vshrl.u32 %v61_v5, 7  ;;  %s76_s6 = sshll.u32 %s156_s5, 4  ;;  %s77_s6 = int_to_ptr.vmem [resolvable:$true] %s76_s6 }
  0x27   :  { %v50_v3 = vsel %vm48_vm0, %v45_v1, 0.0  ;;  %s126_s7 = scalar_lea.vmem %s77_s6, 16  ;;  %s130_s8 = scalar_lea.vmem %s77_s6, 32 }
  0x28   :  { %v51_v4 = vadd.f32 %v50_v3, %v49_v2  ;;  %v65_v12 = vsub.s32 %v62_v6, %v64_v7  ;;  %p127_p1 = scmp.ne.s32.totalorder %s77_s6, %s126_s7  ;;  %p131_p2 = scmp.lt.s32.totalorder %s77_s6, %s77_s6 }
  0x29   :  { %p132_p3 = scmp.lt.s32.totalorder %s130_s8, %s126_s7 }
  0x2a   :  { %52 = vadd.xlane.f32.xlu0 %v51_v4  ;;  %v56_v8 = vstv %s54_s1 }
  0x2b   :  { %v58_v10 = vstv %s87_s4  ;;  %p133_p4 = por %p132_p3, %p131_p2 }
  0x2d   :  { %p134_p5 = pnand %p133_p4, %p127_p1 }
  0xb7   :  { %v53_v9 = vpop.xlane.xlu0 %52 }
  0xb8   :  { %v57_v11 = vmul.f32 %v56_v8, %v53_v9 }
  0xba   :  { %v59_v13 = vadd.f32 %v58_v10, %v57_v11 }
  0xbc   :  { %v66_v14 = vrot.slane %v59_v13, %v65_v12 }
  0xbe   :  { %69 = vst.msk [vmem:[#allocation7] sm:$0x1] %vm68_vm1, %v66_v14 }
  0xbf   :  { %137 = shalt.err (!%p134_p5)
}
  0xc0   :  { %s138_s11 = scalar_lea.hbm %s210_s2, 16 }
  0xc1   :  { %p139_p6 = scmp.ne.s32.totalorder %s210_s2, %s138_s11  ;;  %p142_p7 = scmp.lt.u32.totalorder %s138_s11, %s210_s2 }
  0xc3   :  { %p144_p8 = pnand %p142_p7, %p139_p6 }
  0xc5   :  { %147 = shalt.err (!%p144_p8)
}
  0xc6   :  { %79 = dma.vmem_to_hbm [thread:$0]  %s77_s6, 16, %s210_s2, [#allocation4]  }
  0xc7   :  { %152 = dma.done.wait [#allocation4], 16  }
  0xc8   :  { %153 = vsyncadd [#allocation4], 4294967280 }
  0xc9   :  { %83 = vsyncpa [#allocation3], 1 }
  0xca   :  { %84 = vsyncpa [#allocation4], 1 }
  0xcb   :  { %85 = vsyncpa [#allocation5], 1 }

</bundles_post_ra>
